<compile_context>
chip_gen: v5e
topology: v5e:2x2
jax: 0.10.0
libtpu: 0.0.40
codegen_flags: <defaults>
</compile_context>

<pallas_src>
import jax
import jax.numpy as jnp
from jax.experimental import pallas as pl
from jax.experimental.pallas import tpu as pltpu

_LANE = 128


def _bce_vals(x, t):
    # Exact fusion of  -t*logsigmoid(x) - (1-t)*logsigmoid(-x)
    # = max(x,0) - x*t + log1p(exp(-|x|))   (one exp + one log per element).
    return jnp.maximum(x, 0.0) - x * t + jnp.log1p(jnp.exp(-jnp.abs(x)))


def _make_kernel(tc, with_weights):
    n_blk = tc // _LANE

    def kernel(*refs):
        if with_weights:
            (logits_ref, targets_ref, mask_ref, weights_ref,
             losses_ref, num_acc, den_acc) = refs
        else:
            (logits_ref, targets_ref, mask_ref,
             losses_ref, num_acc, den_acc) = refs

        kc = pl.program_id(1)

        @pl.when(kc == 0)
        def _():
            num_acc[...] = jnp.zeros_like(num_acc)
            den_acc[...] = jnp.zeros_like(den_acc)

        x = logits_ref[...].astype(jnp.float32)
        t = targets_ref[...].astype(jnp.float32)
        m = mask_ref[...].astype(jnp.float32)

        vm = _bce_vals(x, t) * m

        # Lane-dense accumulation: pure VPU adds over the TC/128 lane blocks
        # (static slices), no per-step XLU cross-lane reduction.
        num = num_acc[...]
        den = den_acc[...]
        for j in range(n_blk):
            sl = slice(j * _LANE, (j + 1) * _LANE)
            num = num + vm[:, sl]
            den = den + m[:, sl]
        num_acc[...] = num
        den_acc[...] = den

        @pl.when(kc == pl.num_programs(1) - 1)
        def _():
            # Single cross-lane reduce + exact epsilon division on the last tile.
            num_r = jnp.sum(num_acc[...], axis=-1, keepdims=True)
            den_r = jnp.sum(den_acc[...], axis=-1, keepdims=True)
            losses = num_r / (den_r + 1e-5)
            if with_weights:
                losses = losses * weights_ref[...].astype(jnp.float32)
            losses_ref[...] = losses.astype(losses_ref.dtype)

    return kernel


def _round_up(x, m):
    return ((x + m - 1) // m) * m


def _vmem_limit_and_budget():
    # Generation-aware: 128 MiB physical on v5e/v6e, 64 MiB per TC on v7x.
    try:
        cap = int(pltpu.get_tpu_info().vmem_capacity_bytes)
    except Exception:
        cap = 64 * 1024 * 1024  # conservative fallback (v7x per-TC)
    vmem_limit = min(64 * 1024 * 1024, (cap * 3) // 4)   # 48 MiB v7x, 64 MiB v5e/v6e
    input_budget = vmem_limit // 2                        # ~24 MiB of input buffers
    return vmem_limit, input_budget


def _pick_tiles(B_pad, C_pad, per_elem_bytes, input_budget):
    # Lane (C) tile: largest power-of-two multiple of 128 dividing C_pad.
    tc = _LANE
    for cand in (4096, 2048, 1024, 512, 256, 128):
        if C_pad % cand == 0:
            tc = cand
            break
    # Sublane (B) tile: largest power-of-two candidate dividing B_pad.
    tb = 8
    for cand in (1024, 512, 256, 128, 64, 32, 16, 8):
        if B_pad % cand == 0:
            tb = cand
            break

    def in_bytes(tb_, tc_):
        # 3 input streams x 2 pipeline buffers.
        return 2 * tb_ * tc_ * per_elem_bytes

    while tb > 8 and in_bytes(tb, tc) > input_budget:
        tb //= 2
    while tc > _LANE and in_bytes(tb, tc) > input_budget:
        tc //= 2
    # Keep >= 2 B-tiles so the "parallel" axis can shard across v7x's 2 TCs.
    if B_pad // tb < 2 and tb >= 16:
        tb //= 2
    return tb, tc


def _pad2d(a, B_pad, C_pad):
    B, C = a.shape
    if B == B_pad and C == C_pad:
        return a
    return jnp.pad(a, ((0, B_pad - B), (0, C_pad - C)))


def partial_bce_loss(logits, targets, targets_mask, weights=None,
                     mean_loss=True, tb=None, tc=None):
    B, C = logits.shape
    vmem_limit, input_budget = _vmem_limit_and_budget()

    # --- padding so tiles always divide the (padded) array exactly ---
    if tc is not None:
        assert tc % _LANE == 0, "manual tc must be a multiple of 128"
        C_pad = _round_up(C, tc)
    else:
        C_pad = _round_up(C, _LANE)
    if tb is not None:
        assert tb % 8 == 0, "manual tb must be a multiple of 8"
        B_pad = _round_up(B, tb)
    else:
        B_pad = _round_up(B, 8)

    per_elem_bytes = sum(jnp.dtype(a.dtype).itemsize
                         for a in (logits, targets, targets_mask))
    auto_tb, auto_tc = _pick_tiles(B_pad, C_pad, per_elem_bytes, input_budget)
    TB = tb if tb is not None else auto_tb
    TC = tc if tc is not None else auto_tc
    nb, nc = B_pad // TB, C_pad // TC

    # Zero-padded mask keeps the result exact (numerator and denominator both
    # get zero contributions from padded rows/columns); narrow dtypes stream as-is.
    logits_p = _pad2d(logits, B_pad, C_pad)
    targets_p = _pad2d(targets, B_pad, C_pad)
    mask_p = _pad2d(targets_mask, B_pad, C_pad)

    in_specs = [
        pl.BlockSpec((TB, TC), lambda i, k: (i, k)),  # logits
        pl.BlockSpec((TB, TC), lambda i, k: (i, k)),  # targets
        pl.BlockSpec((TB, TC), lambda i, k: (i, k)),  # targets_mask
    ]
    args = [logits_p, targets_p, mask_p]
    with_weights = weights is not None
    if with_weights:
        w = weights.reshape(B)
        if B_pad != B:
            w = jnp.pad(w, (0, B_pad - B))
        in_specs.append(pl.BlockSpec((TB, 1), lambda i, k: (i, 0)))
        args.append(w.reshape(B_pad, 1))

    kernel = _make_kernel(TC, with_weights)

    losses = pl.pallas_call(
        kernel,
        out_shape=jax.ShapeDtypeStruct((B_pad, 1), jnp.float32),
        grid=(nb, nc),
        in_specs=in_specs,
        out_specs=pl.BlockSpec((TB, 1), lambda i, k: (i, 0)),
        scratch_shapes=[
            pltpu.VMEM((TB, _LANE), jnp.float32),  # lane-dense masked-loss partials
            pltpu.VMEM((TB, _LANE), jnp.float32),  # lane-dense mask-count partials
        ],
        compiler_params=pltpu.CompilerParams(
            dimension_semantics=("parallel", "arbitrary"),
            vmem_limit_bytes=int(vmem_limit)),
    )(*args)

    losses = losses[:B, 0]
    return jnp.mean(losses) if mean_loss else jnp.sum(losses)


def _reference(logits, targets, targets_mask, weights=None, mean_loss=True):
    ls = jax.nn.log_sigmoid
    x = logits.astype(jnp.float32)
    t = targets.astype(jnp.float32)
    m = targets_mask.astype(jnp.float32)
    pos_vals = -t * ls(x)
    neg_vals = -ls(-x) * (1 - t)
    vals = pos_vals + neg_vals
    norm_val = jnp.sum(m, axis=1) + 1e-5
    losses = jnp.sum(vals * m, axis=-1) / norm_val
    if weights is not None:
        losses = losses * weights.astype(jnp.float32)
    return jnp.mean(losses) if mean_loss else jnp.sum(losses)


if __name__ == "__main__":
    key = jax.random.PRNGKey(0)
    k1, k2, k3, k4 = jax.random.split(key, 4)

    # Case 1: small aligned shape, with weights, mean_loss=True (single tile).
    B, C = 8, 128
    logits = jax.random.normal(k1, (B, C), dtype=jnp.float32)
    targets = jax.random.bernoulli(k2, 0.3, (B, C)).astype(jnp.float32)
    targets_mask = jax.random.bernoulli(k3, 0.7, (B, C)).astype(jnp.float32)
    weights = jax.random.uniform(k4, (B,), dtype=jnp.float32)

    loss = partial_bce_loss(logits, targets, targets_mask, weights, mean_loss=True)
    jax.block_until_ready(loss)
    ref = _reference(logits, targets, targets_mask, weights, mean_loss=True)
    assert jnp.allclose(loss, ref, rtol=1e-5, atol=1e-6), (loss, ref)

    # Case 2: no weights, sum reduction.
    loss2 = partial_bce_loss(logits, targets, targets_mask, None, mean_loss=False)
    jax.block_until_ready(loss2)
    ref2 = _reference(logits, targets, targets_mask, None, mean_loss=False)
    assert jnp.allclose(loss2, ref2, rtol=1e-5, atol=1e-6), (loss2, ref2)

    # Case 3: forced small tiles -> grid (2, 2) exercises cross-C-tile accumulation.
    B2, C2 = 16, 256
    kk = jax.random.split(jax.random.PRNGKey(1), 4)
    logits2 = jax.random.normal(kk[0], (B2, C2), dtype=jnp.float32)
    targets2 = jax.random.bernoulli(kk[1], 0.4, (B2, C2)).astype(jnp.float32)
    mask2 = jax.random.bernoulli(kk[2], 0.6, (B2, C2)).astype(jnp.float32)
    weights2 = jax.random.uniform(kk[3], (B2,), dtype=jnp.float32)

    loss3 = partial_bce_loss(logits2, targets2, mask2, weights2,
                             mean_loss=True, tb=8, tc=128)
    jax.block_until_ready(loss3)
    ref3 = _reference(logits2, targets2, mask2, weights2, mean_loss=True)
    assert jnp.allclose(loss3, ref3, rtol=1e-5, atol=1e-6), (loss3, ref3)

    # Case 4: unaligned shape (B=10, C=200 -> padded to 16 x 256), narrow dtypes:
    # bf16 logits/targets + bool mask stream at a fraction of f32 HBM bytes.
    B3, C3 = 10, 200
    km = jax.random.split(jax.random.PRNGKey(2), 4)
    logits3 = jax.random.normal(km[0], (B3, C3), dtype=jnp.float32)
    targets3 = jax.random.bernoulli(km[1], 0.4, (B3, C3)).astype(jnp.float32)
    mask3 = jax.random.bernoulli(km[2], 0.6, (B3, C3))          # bool
    weights3 = jax.random.uniform(km[3], (B3,), dtype=jnp.float32)

    loss4 = partial_bce_loss(logits3.astype(jnp.bfloat16),
                             targets3.astype(jnp.bfloat16),
                             mask3, weights3, mean_loss=False)
    jax.block_until_ready(loss4)
    ref4 = _reference(logits3.astype(jnp.bfloat16).astype(jnp.float32),
                      targets3.astype(jnp.bfloat16).astype(jnp.float32),
                      mask3.astype(jnp.float32), weights3, mean_loss=False)
    assert jnp.allclose(loss4, ref4, rtol=2e-2, atol=2e-2), (loss4, ref4)

    print("KERNEL_OK")
</pallas_src>

<mosaic_0001>
module attributes {stable_mosaic.version = 11 : i64} {
  func.func @kernel(%arg0: i32, %arg1: i32, %arg2: memref<8x128xf32, #tpu.memory_space<vmem>>, %arg3: memref<8x128xf32, #tpu.memory_space<vmem>>, %arg4: memref<8x128xf32, #tpu.memory_space<vmem>>, %arg5: memref<8x1xf32, #tpu.memory_space<vmem>>, %arg6: memref<8x1xf32, #tpu.memory_space<vmem>>, %arg7: memref<8x128xf32, #tpu.memory_space<vmem>>, %arg8: memref<8x128xf32, #tpu.memory_space<vmem>>) attributes {dimension_semantics = [#tpu.dimension_semantics<parallel>, #tpu.dimension_semantics<arbitrary>], iteration_bounds = array<i64: 1, 1>, scalar_prefetch = 0 : i64, scratch_operands = 2 : i64, tpu.core_type = #tpu.core_type<tc>, window_params = [{transform_indices = @transform_0, window_bounds = array<i64: 8, 128>}, {transform_indices = @transform_1, window_bounds = array<i64: 8, 128>}, {transform_indices = @transform_2, window_bounds = array<i64: 8, 128>}, {transform_indices = @transform_3, window_bounds = array<i64: 8, 1>}, {transform_indices = @transform_4, window_bounds = array<i64: 8, 1>}]} {
    %c0_i32 = arith.constant 0 : i32
    %0 = arith.cmpi eq, %arg1, %c0_i32 : i32
    %1 = arith.extui %0 : i1 to i32
    %c0_i32_0 = arith.constant 0 : i32
    %2 = arith.cmpi ne, %1, %c0_i32_0 : i32
    scf.if %2 {
      %cst_17 = arith.constant 0.000000e+00 : f32
      %26 = vector.broadcast %cst_17 : f32 to vector<8x128xf32>
      %c0_18 = arith.constant 0 : index
      %c0_19 = arith.constant 0 : index
      %27 = vector.load %arg7[%c0_18, %c0_19] : memref<8x128xf32, #tpu.memory_space<vmem>>, vector<8x128xf32>
      tpu.vector_store %arg7[%c0_18, %c0_19], %26 {strides = array<i32>} : memref<8x128xf32, #tpu.memory_space<vmem>>, vector<8x128xf32>,
      %cst_20 = arith.constant 0.000000e+00 : f32
      %28 = vector.broadcast %cst_20 : f32 to vector<8x128xf32>
      %c0_21 = arith.constant 0 : index
      %c0_22 = arith.constant 0 : index
      %29 = vector.load %arg8[%c0_21, %c0_22] : memref<8x128xf32, #tpu.memory_space<vmem>>, vector<8x128xf32>
      tpu.vector_store %arg8[%c0_21, %c0_22], %28 {strides = array<i32>} : memref<8x128xf32, #tpu.memory_space<vmem>>, vector<8x128xf32>,
    } else {
    }
    %c0 = arith.constant 0 : index
    %c0_1 = arith.constant 0 : index
    %3 = vector.load %arg2[%c0, %c0_1] : memref<8x128xf32, #tpu.memory_space<vmem>>, vector<8x128xf32>
    %c0_2 = arith.constant 0 : index
    %c0_3 = arith.constant 0 : index
    %4 = vector.load %arg3[%c0_2, %c0_3] : memref<8x128xf32, #tpu.memory_space<vmem>>, vector<8x128xf32>
    %c0_4 = arith.constant 0 : index
    %c0_5 = arith.constant 0 : index
    %5 = vector.load %arg4[%c0_4, %c0_5] : memref<8x128xf32, #tpu.memory_space<vmem>>, vector<8x128xf32>
    %cst = arith.constant 0.000000e+00 : f32
    %6 = vector.broadcast %cst : f32 to vector<8x128xf32>
    %7 = arith.maximumf %3, %6 : vector<8x128xf32>
    %8 = arith.mulf %3, %4 : vector<8x128xf32>
    %9 = arith.subf %7, %8 : vector<8x128xf32>
    %10 = math.absf %3 : vector<8x128xf32>
    %cst_6 = arith.constant 0.000000e+00 : f32
    %11 = vector.broadcast %cst_6 : f32 to vector<8x128xf32>
    %12 = arith.subf %11, %10 : vector<8x128xf32>
    %13 = math.exp %12 : vector<8x128xf32>
    %14 = math.log1p %13 : vector<8x128xf32>
    %15 = arith.addf %9, %14 : vector<8x128xf32>
    %16 = arith.mulf %15, %5 : vector<8x128xf32>
    %c0_7 = arith.constant 0 : index
    %c0_8 = arith.constant 0 : index
    %17 = vector.load %arg7[%c0_7, %c0_8] : memref<8x128xf32, #tpu.memory_space<vmem>>, vector<8x128xf32>
    %c0_9 = arith.constant 0 : index
    %c0_10 = arith.constant 0 : index
    %18 = vector.load %arg8[%c0_9, %c0_10] : memref<8x128xf32, #tpu.memory_space<vmem>>, vector<8x128xf32>
    %19 = arith.addf %17, %16 : vector<8x128xf32>
    %20 = arith.addf %18, %5 : vector<8x128xf32>
    %c0_11 = arith.constant 0 : index
    %c0_12 = arith.constant 0 : index
    %21 = vector.load %arg7[%c0_11, %c0_12] : memref<8x128xf32, #tpu.memory_space<vmem>>, vector<8x128xf32>
    tpu.vector_store %arg7[%c0_11, %c0_12], %19 {strides = array<i32>} : memref<8x128xf32, #tpu.memory_space<vmem>>, vector<8x128xf32>,
    %c0_13 = arith.constant 0 : index
    %c0_14 = arith.constant 0 : index
    %22 = vector.load %arg8[%c0_13, %c0_14] : memref<8x128xf32, #tpu.memory_space<vmem>>, vector<8x128xf32>
    tpu.vector_store %arg8[%c0_13, %c0_14], %20 {strides = array<i32>} : memref<8x128xf32, #tpu.memory_space<vmem>>, vector<8x128xf32>,
    %c0_i32_15 = arith.constant 0 : i32
    %23 = arith.cmpi eq, %arg1, %c0_i32_15 : i32
    %24 = arith.extui %23 : i1 to i32
    %c0_i32_16 = arith.constant 0 : i32
    %25 = arith.cmpi ne, %24, %c0_i32_16 : i32
    scf.if %25 {
      %c0_17 = arith.constant 0 : index
      %c0_18 = arith.constant 0 : index
      %26 = vector.load %arg7[%c0_17, %c0_18] : memref<8x128xf32, #tpu.memory_space<vmem>>, vector<8x128xf32>
      %cst_19 = arith.constant dense<0.000000e+00> : vector<8xf32>
      %27 = vector.multi_reduction <add>, %26, %cst_19 [1] : vector<8x128xf32> to vector<8xf32>
      %28 = vector.shape_cast %27 : vector<8xf32> to vector<8x1xf32>
      %c0_20 = arith.constant 0 : index
      %c0_21 = arith.constant 0 : index
      %29 = vector.load %arg8[%c0_20, %c0_21] : memref<8x128xf32, #tpu.memory_space<vmem>>, vector<8x128xf32>
      %cst_22 = arith.constant dense<0.000000e+00> : vector<8xf32>
      %30 = vector.multi_reduction <add>, %29, %cst_22 [1] : vector<8x128xf32> to vector<8xf32>
      %31 = vector.shape_cast %30 : vector<8xf32> to vector<8x1xf32>
      %cst_23 = arith.constant 9.99999974E-6 : f32
      %32 = vector.broadcast %cst_23 : f32 to vector<8x1xf32>
      %33 = arith.addf %31, %32 : vector<8x1xf32>
      %34 = arith.divf %28, %33 : vector<8x1xf32>
      %c0_24 = arith.constant 0 : index
      %c0_25 = arith.constant 0 : index
      %35 = vector.load %arg5[%c0_24, %c0_25] : memref<8x1xf32, #tpu.memory_space<vmem>>, vector<8x1xf32>
      %36 = arith.mulf %34, %35 : vector<8x1xf32>
      %c0_26 = arith.constant 0 : index
      %c0_27 = arith.constant 0 : index
      %37 = vector.load %arg6[%c0_26, %c0_27] : memref<8x1xf32, #tpu.memory_space<vmem>>, vector<8x1xf32>
      tpu.vector_store %arg6[%c0_26, %c0_27], %36 {strides = array<i32>} : memref<8x1xf32, #tpu.memory_space<vmem>>, vector<8x1xf32>,
    } else {
    }
    return
  }
  func.func @transform_0(%arg0: i32, %arg1: i32) -> (i32, i32) {
    %c0_i32 = arith.constant 0 : i32
    return %arg0, %arg1 : i32, i32
  }
  func.func @transform_1(%arg0: i32, %arg1: i32) -> (i32, i32) {
    %c0_i32 = arith.constant 0 : i32
    return %arg0, %arg1 : i32, i32
  }
  func.func @transform_2(%arg0: i32, %arg1: i32) -> (i32, i32) {
    %c0_i32 = arith.constant 0 : i32
    return %arg0, %arg1 : i32, i32
  }
  func.func @transform_3(%arg0: i32, %arg1: i32) -> (i32, i32) {
    %c0_i32 = arith.constant 0 : i32
    %c0_i32_0 = arith.constant 0 : i32
    return %arg0, %c0_i32 : i32, i32
  }
  func.func @transform_4(%arg0: i32, %arg1: i32) -> (i32, i32) {
    %c0_i32 = arith.constant 0 : i32
    %c0_i32_0 = arith.constant 0 : i32
    return %arg0, %c0_i32 : i32, i32
  }
}

</mosaic_0001>

<bundles_post_ra>
// kernel: tpu_custom_call.1
= control target key start
LH: loop header
LB: loop body
LE: loop exit
PB: predicated region body
PF: predicated region fallthrough
CT: control target
= control target key end

     0   :  { %9 = vsyncpa [#allocation5], 0  ;;  %s215_s0 = inlined_call_operand.vmem [shape: f32[8,128], index: 0, kind: input, shape index: {}]   ;;  %s216_s1 = inlined_call_operand.hbm [shape: f32[8,128], index: 1, kind: input, shape index: {}]   ;;  %s217_s2 = inlined_call_operand.hbm [shape: f32[8,128], index: 2, kind: input, shape index: {}]   ;;  %s218_s3 = inlined_call_operand.vmem [shape: f32[8,1], index: 3, kind: input, shape index: {}]   ;;  %s219_s4 = inlined_call_operand.vmem [shape: f32[8,1], index: 4, kind: output, shape index: {}]  }
   0x1   :  { %s18_s17 = sshll.u32 %s216_s1, 4  ;;  %s19_s17 = int_to_ptr.hbm [resolvable:$true] %s18_s17 }
   0x2   :  { %10 = vsyncpa [#allocation7], 0  ;;  %s173_s18 = smov [#allocation4]   ;;  %s29_s22 = sshll.u32 %s217_s2, 4  ;;  %s30_s22 = int_to_ptr.hbm [resolvable:$true] %s29_s22 }
   0x3   :  { %s20_s19 = sshll.u32 %s173_s18, 4  ;;  %s174_s23 = smov [#allocation6]   ;;  %s21_s19 = int_to_ptr.vmem [resolvable:$true] %s20_s19 }
   0x4   :  { %23 = dma.hbm_to_vmem [thread:$0]  %s19_s17, 128, %s21_s19, [#allocation5]  }
   0x5   :  { %s31_s24 = sshll.u32 %s174_s23, 4  ;;  %s32_s24 = int_to_ptr.vmem [resolvable:$true] %s31_s24 }
   0x6   :  { %34 = dma.hbm_to_vmem [thread:$0]  %s30_s22, 128, %s32_s24, [#allocation7]  }
   0x7   :  { %169 = dma.done.wait [#allocation5], 128  }
   0x8   :  { %170 = vsyncadd [#allocation5], 4294967168 }
   0x9   :  { %171 = dma.done.wait [#allocation7], 128  }
   0xa   :  { %172 = vsyncadd [#allocation7], 4294967168  ;;  %v53_v0 = vld [vmem:[#allocation6] sm:$0xff]  ;;  %v51_v1 = vld [vmem:[%s215_s0] sm:$0xff]  ;;  %vm105_vm5 = vcmask 7168  }
   0xb   :  { %85 = vadd.xlane.f32.xlu0 %v53_v0  ;;  %v57_v2 = vand.u32 2147483647, %v51_v1  ;;  %v52_v8 = vld [vmem:[#allocation4] sm:$0xff]  ;;  %v54_v10 = vmax.f32 %v51_v1, 0.0 }
   0xc   :  { %v55_v11 = vmul.f32 %v52_v8, %v51_v1  ;;  %v103_v32 = vld [vmem:[%s218_s3] sm:$0xff] }
   0xd   :  { %v58_v3 = vsub.f32 0.0, %v57_v2 }
   0xe   :  { %v56_v15 = vsub.f32 %v54_v10, %v55_v11 }
   0xf   :  { %v59_v4 = vmul.f32 1.442695, %v58_v3 }
  0x11   :  { %115 = vpow2.f32 %v59_v4 }
  0x17   :  { %v116_v5 = vpop.eup %115 }
  0x18   :  { %v61_v6 = vadd.f32 1.0, %v116_v5  ;;  %v64_v7 = vmul.f32 -0.5, %v116_v5  ;;  %v67_v12 = vand.u32 2147483647, %v116_v5 }
  0x1a   :  { %117 = vlog2.f32 %v61_v6  ;;  %v65_v9 = vadd.f32 1.0, %v64_v7  ;;  %vm68_vm0 = vcmp.lt.f32.partialorder %v67_v12, 0.0004427343 }
  0x1c   :  { %v66_v13 = vmul.f32 %v116_v5, %v65_v9 }
  0x20   :  { %v118_v14 = vpop.eup %117 }
  0x21   :  { %v63_v16 = vmul.f32 0.6931472, %v118_v14 }
  0x23   :  { %v69_v17 = vsel %vm68_vm0, %v66_v13, %v63_v16 }
  0x24   :  { %v70_v18 = vadd.f32 %v69_v17, %v56_v15 }
  0x26   :  { %v71_v19 = vmul.f32 %v70_v18, %v53_v0 }
  0x28   :  { %82 = vadd.xlane.f32.xlu0 %v71_v19 }
  0x7e   :  { %v86_v20 = vpop.xlane.xlu0 %85 }
  0x7f   :  { %v87_v21 = vadd.f32 1e-05, %v86_v20 }
  0x81   :  { %119 = vrcp.f32 %v87_v21  ;;  %vm93_vm1 = vweird.f32 %v87_v21  ;;  %v99_v27 = vand.u32 2147483648, %v87_v21  ;;  %v97_v28 = vand.u32 2147483647, %v87_v21 }
  0x83   :  { %v100_v30 = vor.u32 1.1754944e-38, %v99_v27  ;;  %vm98_vm4 = vcmp.eq.f32.partialorder %v97_v28, 8.507059e+37 }
  0x87   :  { %v120_v22 = vpop.eup %119 }
  0x88   :  { %v89_v23 = vmul.f32 %v120_v22, %v87_v21  ;;  %vm94_vm2 = vweird.f32 %v120_v22 }
  0x89   :  { %vm95_vm3 = vmor %vm93_vm1, %vm94_vm2 }
  0x8a   :  { %v90_v24 = vsub.f32 1.0, %v89_v23 }
  0x8c   :  { %v91_v25 = vmul.f32 %v120_v22, %v90_v24 }
  0x8e   :  { %v92_v26 = vadd.f32 %v120_v22, %v91_v25 }
  0x90   :  { %v96_v29 = vsel %vm95_vm3, %v120_v22, %v92_v26 }
  0x91   :  { %v101_v31 = vsel %vm98_vm4, %v100_v30, %v96_v29 }
  0x9b   :  { %v83_v33 = vpop.xlane.xlu0 %82 }
  0x9c   :  { %v102_v34 = vmul.f32 %v101_v31, %v83_v33 }
  0x9e   :  { %v104_v35 = vmul.f32 %v103_v32, %v102_v34 }
  0xa0   :  { %106 = vst.msk [vmem:[%s219_s4] sm:$0xff] %vm105_vm5, %v104_v35 }
  0xa1   :  { %111 = vsyncpa [#allocation5], 1 }
  0xa2   :  { %112 = vsyncpa [#allocation7], 1 }

</bundles_post_ra>
